<compile_context>
chip_gen: v7x
topology: tpu7x:2x2x1
jax: 0.10.0
libtpu: 0.0.40
codegen_flags: <defaults>
</compile_context>

<pallas_src>
import functools
import math

import jax
import jax.numpy as jnp
from jax import lax
from jax.experimental import pallas as pl
from jax.experimental.pallas import tpu as pltpu


def _round_down_mult(v, m):
    return (v // m) * m


def _vmem_capacity_bytes():
    try:
        return int(pltpu.get_tpu_info().vmem_capacity_bytes)
    except Exception:
        return 64 << 20  # conservative (v7x-sized) fallback


# --------------------------- fused single-pass kernel ---------------------------

def _fused_grn_kernel(x_ref, gamma_ref, beta_ref, o_ref, *, k, c, chunk, s_rows):
    """Whole-slab GRN for one batch element.

    x_ref / o_ref : (1, S_rows, CF) with CF = k*C (lane-folded channels)
    gamma_ref / beta_ref : (1, 1, CF) f32 (already tiled k times over C)
    """
    cf = k * c
    n_full = s_rows // chunk
    rem = s_rows - n_full * chunk

    # ---- per-lane sum of squares, chunked to bound f32 temporaries ----
    def sq_slice(start, size):
        xb = x_ref[:, pl.ds(start, size), :].astype(jnp.float32)
        return jnp.sum(xb * xb, axis=1, keepdims=True)          # (1, 1, CF)

    acc0 = jnp.zeros((1, 1, cf), jnp.float32)
    if n_full > 0:
        ssq = lax.fori_loop(0, n_full, lambda i, a: a + sq_slice(i * chunk, chunk), acc0)
    else:
        ssq = acc0
    if rem > 0:
        ssq = ssq + sq_slice(n_full * chunk, rem)

    # ---- reduce over the k fold groups (lane j -> channel j % C) ----
    # sum_m ssq[(j - m*C) mod k*C] equals the per-channel ssq, already broadcast
    # back to all fold groups, so no reshape / concat is needed.
    tot = ssq
    for m in range(1, k):
        tot = tot + pltpu.roll(ssq, shift=m * c, axis=2)

    gx = jnp.sqrt(tot)                                           # (1, 1, CF)
    # each channel appears k times on the lane axis, so sum/CF == mean over C
    mean_gx = jnp.sum(gx, axis=-1, keepdims=True) * (1.0 / cf)
    nx = gx / (mean_gx + 1e-6)
    coef = 1.0 + gamma_ref[...] * nx                             # f32 (1, 1, CF)
    beta = beta_ref[...]                                         # f32 (1, 1, CF)

    # ---- apply: y = x * coef + beta (f32 math, cast at the store) ----
    def apply_slice(start, size):
        xb = x_ref[:, pl.ds(start, size), :].astype(jnp.float32)
        o_ref[:, pl.ds(start, size), :] = (xb * coef + beta).astype(o_ref.dtype)

    if n_full > 0:
        def body(i, carry):
            apply_slice(i * chunk, chunk)
            return carry
        lax.fori_loop(0, n_full, body, 0)
    if rem > 0:
        apply_slice(n_full * chunk, rem)


# ------------------------------ two-pass kernels -------------------------------

def _ssq_kernel(x_ref, ssq_ref, *, ts, s_rows, n_inner, need_mask):
    """Pass 1: per-lane sum of squares, f32 accumulation in a resident block."""
    i = pl.program_id(2)

    @pl.when(i == 0)
    def _init():
        ssq_ref[...] = jnp.zeros_like(ssq_ref)

    x = x_ref[...].astype(jnp.float32)                           # (1, ts, CF)
    if need_mask:
        p = pl.program_id(1)
        row0 = (p * n_inner + i) * ts
        rows = row0 + lax.broadcasted_iota(jnp.int32, x.shape, 1)
        x = jnp.where(rows < s_rows, x, 0.0)
    ssq_ref[...] += jnp.sum(x * x, axis=1, keepdims=True)


def _apply_kernel(x_ref, coef_ref, beta_ref, o_ref):
    """Pass 2: y = x * coef + beta, f32 math, cast only at the store."""
    xf = x_ref[...].astype(jnp.float32)
    o_ref[...] = (xf * coef_ref[...] + beta_ref[...]).astype(o_ref.dtype)


# ----------------------------------- wrapper ------------------------------------

def grn_pallas(x, gamma, beta, *, force_two_pass=False, tile_rows=None):
    """x: (N, D, H, W, C); gamma, beta: broadcastable to (..., C)."""
    N, D, H, W, C = x.shape
    S = D * H * W
    itemsize = jnp.dtype(x.dtype).itemsize
    pack = max(8, 32 // itemsize)        # sublane rows per 32-bit packing unit

    # Lane folding: make the lane axis a multiple of 128 so the (mem-bound)
    # passes do unmasked, lane-dense loads/stores.
    if C % 128 == 0:
        k = 1
    else:
        k = 128 // math.gcd(C, 128)
        if k > 16 or S % k != 0:
            k = 1                         # fallback: masked stores, still correct
    CF = k * C
    S_rows = S // k
    x_fold = x.reshape(N, S_rows, CF)     # pure reshape of contiguous memory (free)

    gamma_c = gamma.reshape(C).astype(jnp.float32)
    beta_c = beta.reshape(C).astype(jnp.float32)

    vmem_cap = _vmem_capacity_bytes()
    cap_limit = max(16 << 20, int(vmem_cap * 0.85))   # never exceed physical VMEM

    # Row chunk for bounded f32 temporaries inside the fused kernel (~1 MiB).
    chunk = _round_down_mult((1 << 20) // max(1, CF * 4), pack)
    chunk = max(1, min(S_rows, max(pack, chunk)))

    slab_bytes = S_rows * CF * itemsize
    need_fused = 4 * slab_bytes + 4 * chunk * CF * 4 + (2 << 20)
    use_fused = (not force_two_pass) and (need_fused <= cap_limit)

    if use_fused:
        # ---------------- fused single-pass path: read x once, write once ----------------
        gamma_fold = jnp.tile(gamma_c, (k,)).reshape(1, 1, CF)
        beta_fold = jnp.tile(beta_c, (k,)).reshape(1, 1, CF)
        out = pl.pallas_call(
            functools.partial(_fused_grn_kernel, k=k, c=C, chunk=chunk, s_rows=S_rows),
            out_shape=jax.ShapeDtypeStruct((N, S_rows, CF), x.dtype),
            grid_spec=pltpu.PrefetchScalarGridSpec(
                num_scalar_prefetch=0,
                grid=(N,),
                in_specs=[
                    pl.BlockSpec((1, S_rows, CF), lambda n: (n, 0, 0)),
                    pl.BlockSpec((1, 1, CF), lambda n: (0, 0, 0)),
                    pl.BlockSpec((1, 1, CF), lambda n: (0, 0, 0)),
                ],
                out_specs=pl.BlockSpec((1, S_rows, CF), lambda n: (n, 0, 0)),
            ),
            compiler_params=pltpu.CompilerParams(
                dimension_semantics=("parallel",),
                vmem_limit_bytes=int(min(cap_limit, max(32 << 20, need_fused))),
            ),
        )(x_fold, gamma_fold, beta_fold)
        return out.reshape(N, D, H, W, C)

    # --------------------------- two-pass fallback path ---------------------------
    if tile_rows is not None:
        ts = int(min(max(1, tile_rows), S_rows))
        if ts < S_rows:
            ts = max(pack, _round_down_mult(ts, pack))
    else:
        # Real-itemsize tile sizing; smaller target on small-VMEM (v7x) chips.
        target = (4 << 20) if vmem_cap <= (64 << 20) else (8 << 20)
        t = _round_down_mult(target // max(1, CF * itemsize), pack)
        ts = S_rows if max(pack, t) >= S_rows else max(pack, t)

    def two_pass_need(rows):
        return 4 * rows * CF * itemsize + 3 * rows * CF * 4 + (4 << 20)

    while ts > pack and two_pass_need(ts) > cap_limit:
        new_ts = max(pack, _round_down_mult(max(ts // 2, pack), pack))
        if new_ts == ts:
            break
        ts = new_ts

    n_st = -(-S_rows // ts)                     # ceil-div; ragged last tile is masked
    need_mask = (S_rows % ts) != 0
    P = 2 if (n_st % 2 == 0 and n_st >= 4) else 1   # parallel split of the reduction
    n_inner = n_st // P
    vmem_limit = int(min(cap_limit, max(32 << 20, two_pass_need(ts))))

    # ---- Pass 1: per-lane sum of squares, f32 accumulation ----
    ssq_part = pl.pallas_call(
        functools.partial(_ssq_kernel, ts=ts, s_rows=S_rows,
                          n_inner=n_inner, need_mask=need_mask),
        out_shape=jax.ShapeDtypeStruct((N * P, 1, CF), jnp.float32),
        grid_spec=pltpu.PrefetchScalarGridSpec(
            num_scalar_prefetch=0,
            grid=(N, P, n_inner),
            in_specs=[pl.BlockSpec((1, ts, CF),
                                   lambda n, p, i: (n, p * n_inner + i, 0))],
            out_specs=pl.BlockSpec((1, 1, CF), lambda n, p, i: (n * P + p, 0, 0)),
        ),
        compiler_params=pltpu.CompilerParams(
            dimension_semantics=("parallel", "parallel", "arbitrary"),
            vmem_limit_bytes=vmem_limit,
        ),
    )(x_fold)

    # ---- Tiny per-channel epilogue (N*C elements) in plain JAX, all f32 ----
    ssq = ssq_part.reshape(N, P, CF).sum(axis=1)                # fold the P split
    ssq = ssq.reshape(N, k, C).sum(axis=1)                      # fold groups -> (N, C)
    gx = jnp.sqrt(ssq)
    nx = gx / (jnp.mean(gx, axis=-1, keepdims=True) + 1e-6)
    coef = 1.0 + gamma_c[None, :] * nx                          # (N, C) f32
    coef_fold = jnp.tile(coef, (1, k)).reshape(N, 1, CF)        # stays f32
    beta_fold = jnp.tile(beta_c, (k,)).reshape(1, 1, CF)        # stays f32

    # ---- Pass 2: lane-dense elementwise apply ----
    out = pl.pallas_call(
        _apply_kernel,
        out_shape=jax.ShapeDtypeStruct((N, S_rows, CF), x.dtype),
        grid_spec=pltpu.PrefetchScalarGridSpec(
            num_scalar_prefetch=0,
            grid=(N, n_st),
            in_specs=[
                pl.BlockSpec((1, ts, CF), lambda n, s: (n, s, 0)),   # x tile
                pl.BlockSpec((1, 1, CF), lambda n, s: (n, 0, 0)),    # coef (per batch)
                pl.BlockSpec((1, 1, CF), lambda n, s: (0, 0, 0)),    # beta (replicated)
            ],
            out_specs=pl.BlockSpec((1, ts, CF), lambda n, s: (n, s, 0)),
        ),
        compiler_params=pltpu.CompilerParams(
            dimension_semantics=("parallel", "parallel"),
            vmem_limit_bytes=vmem_limit,
        ),
    )(x_fold, coef_fold, beta_fold)

    return out.reshape(N, D, H, W, C)


def grn_ref(x, gamma, beta):
    """Pure-JAX reference mirroring the PyTorch forward (f32 math)."""
    xf = x.astype(jnp.float32)
    gx = jnp.sqrt(jnp.sum(xf * xf, axis=(1, 2, 3), keepdims=True))
    nx = gx / (jnp.mean(gx, axis=-1, keepdims=True) + 1e-6)
    return gamma.astype(jnp.float32) * (xf * nx) + beta.astype(jnp.float32) + xf


if __name__ == "__main__":
    key = jax.random.PRNGKey(0)
    kx, kg, kb, kx2 = jax.random.split(key, 4)

    def check(y, x, gamma, beta, atol, name):
        y_ref = grn_ref(x, gamma, beta)
        assert y.shape == x.shape, (name, y.shape, x.shape)
        err = float(jnp.max(jnp.abs(y.astype(jnp.float32) - y_ref)))
        assert err <= atol, (name, err)

    # Case 1: f32, C=32 -> lane fold k=4 (CF=128), fused single-pass path.
    N, Dd, Hh, Ww, C = 2, 4, 8, 8, 32
    x = jax.random.normal(kx, (N, Dd, Hh, Ww, C), dtype=jnp.float32)
    gamma = 0.1 * jax.random.normal(kg, (1, 1, 1, 1, C), dtype=jnp.float32)
    beta = 0.1 * jax.random.normal(kb, (1, 1, 1, 1, C), dtype=jnp.float32)
    y = jax.block_until_ready(jax.jit(grn_pallas)(x, gamma, beta))
    check(y, x, gamma, beta, 1e-4, "fused_f32_fold")

    # Case 2: forced two-pass, even tile count -> P=2 parallel reduction split.
    f2 = jax.jit(functools.partial(grn_pallas, force_two_pass=True, tile_rows=16))
    y = jax.block_until_ready(f2(x, gamma, beta))
    check(y, x, gamma, beta, 1e-4, "two_pass_P2")

    # Case 3: forced two-pass, ragged last tile -> masked reduction path.
    f3 = jax.jit(functools.partial(grn_pallas, force_two_pass=True, tile_rows=24))
    y = jax.block_until_ready(f3(x, gamma, beta))
    check(y, x, gamma, beta, 1e-4, "two_pass_masked")

    # Case 4: bf16, C=128 (no fold), fused path; f32 internal math.
    N2, D2, H2, W2, C2 = 2, 2, 8, 8, 128
    xb = jax.random.normal(kx2, (N2, D2, H2, W2, C2), dtype=jnp.float32).astype(jnp.bfloat16)
    gamma2 = 0.1 * jax.random.normal(kg, (1, 1, 1, 1, C2), dtype=jnp.float32)
    beta2 = 0.1 * jax.random.normal(kb, (1, 1, 1, 1, C2), dtype=jnp.float32)
    y = jax.block_until_ready(jax.jit(grn_pallas)(xb, gamma2, beta2))
    check(y, xb, gamma2, beta2, 5e-2, "fused_bf16")

    # Case 5: bf16 forced two-pass (f32 coef/beta kept through the apply pass).
    f5 = jax.jit(functools.partial(grn_pallas, force_two_pass=True, tile_rows=32))
    y = jax.block_until_ready(f5(xb, gamma2, beta2))
    check(y, xb, gamma2, beta2, 5e-2, "two_pass_bf16")

    print("KERNEL_OK")
</pallas_src>

<mosaic_0001>
module attributes {stable_mosaic.version = 11 : i64} {
  func.func @_fused_grn_kernel(%arg0: i32, %arg1: memref<1x64x128xf32, #tpu.memory_space<vmem>>, %arg2: memref<1x1x128xf32, #tpu.memory_space<vmem>>, %arg3: memref<1x1x128xf32, #tpu.memory_space<vmem>>, %arg4: memref<1x64x128xf32, #tpu.memory_space<vmem>>) attributes {dimension_semantics = [#tpu.dimension_semantics<parallel>], iteration_bounds = array<i64: 2>, scalar_prefetch = 0 : i64, scratch_operands = 0 : i64, tpu.core_type = #tpu.core_type<tc>, window_params = [{transform_indices = @transform_0, window_bounds = array<i64: 1, 64, 128>}, {pipeline_mode = #tpu.pipeline_mode<synchronous>, transform_indices = @transform_1, window_bounds = array<i64: 1, 1, 128>}, {pipeline_mode = #tpu.pipeline_mode<synchronous>, transform_indices = @transform_2, window_bounds = array<i64: 1, 1, 128>}, {transform_indices = @transform_3, window_bounds = array<i64: 1, 64, 128>}]} {
    %cst = arith.constant 0.000000e+00 : f32
    %0 = vector.broadcast %cst : f32 to vector<1x1x128xf32>
    %c0_i32 = arith.constant 0 : i32
    %c64_i32 = arith.constant 64 : i32
    %1 = arith.muli %c0_i32, %c64_i32 : i32
    %c0 = arith.constant 0 : index
    %2 = arith.index_cast %1 : i32 to index
    %c0_0 = arith.constant 0 : index
    %3 = vector.load %arg1[%c0, %2, %c0_0] : memref<1x64x128xf32, #tpu.memory_space<vmem>>, vector<1x64x128xf32>
    %4 = arith.mulf %3, %3 : vector<1x64x128xf32>
    %cst_1 = arith.constant dense<0.000000e+00> : vector<1x128xf32>
    %5 = vector.multi_reduction <add>, %4, %cst_1 [1] : vector<1x64x128xf32> to vector<1x128xf32>
    %6 = vector.shape_cast %5 : vector<1x128xf32> to vector<1x1x128xf32>
    %7 = arith.addf %0, %6 : vector<1x1x128xf32>
    %c1_i32 = arith.constant 1 : i32
    %c32_i32 = arith.constant 32 : i32
    %8 = tpu.dynamic_rotate %7 by %c32_i32 dim 2 : vector<1x1x128xf32>, i32 -> vector<1x1x128xf32>
    %9 = arith.addf %7, %8 : vector<1x1x128xf32>
    %c64_i32_2 = arith.constant 64 : i32
    %10 = tpu.dynamic_rotate %7 by %c64_i32_2 dim 2 : vector<1x1x128xf32>, i32 -> vector<1x1x128xf32>
    %11 = arith.addf %9, %10 : vector<1x1x128xf32>
    %c96_i32 = arith.constant 96 : i32
    %12 = tpu.dynamic_rotate %7 by %c96_i32 dim 2 : vector<1x1x128xf32>, i32 -> vector<1x1x128xf32>
    %13 = arith.addf %11, %12 : vector<1x1x128xf32>
    %14 = math.sqrt %13 : vector<1x1x128xf32>
    %cst_3 = arith.constant dense<0.000000e+00> : vector<1x1xf32>
    %15 = vector.multi_reduction <add>, %14, %cst_3 [2] : vector<1x1x128xf32> to vector<1x1xf32>
    %16 = vector.shape_cast %15 : vector<1x1xf32> to vector<1x1x1xf32>
    %cst_4 = arith.constant 7.812500e-03 : f32
    %17 = vector.broadcast %cst_4 : f32 to vector<1x1x1xf32>
    %18 = arith.mulf %16, %17 : vector<1x1x1xf32>
    %cst_5 = arith.constant 9.99999997E-7 : f32
    %19 = vector.broadcast %cst_5 : f32 to vector<1x1x1xf32>
    %20 = arith.addf %18, %19 : vector<1x1x1xf32>
    %21 = vector.broadcast %20 : vector<1x1x1xf32> to vector<1x1x128xf32>
    %22 = arith.divf %14, %21 : vector<1x1x128xf32>
    %c0_6 = arith.constant 0 : index
    %c0_7 = arith.constant 0 : index
    %c0_8 = arith.constant 0 : index
    %23 = vector.load %arg2[%c0_6, %c0_7, %c0_8] : memref<1x1x128xf32, #tpu.memory_space<vmem>>, vector<1x1x128xf32>
    %24 = arith.mulf %23, %22 : vector<1x1x128xf32>
    %cst_9 = arith.constant 1.000000e+00 : f32
    %25 = vector.broadcast %cst_9 : f32 to vector<1x1x128xf32>
    %26 = arith.addf %25, %24 : vector<1x1x128xf32>
    %c0_10 = arith.constant 0 : index
    %c0_11 = arith.constant 0 : index
    %c0_12 = arith.constant 0 : index
    %27 = vector.load %arg3[%c0_10, %c0_11, %c0_12] : memref<1x1x128xf32, #tpu.memory_space<vmem>>, vector<1x1x128xf32>
    %c0_i32_13 = arith.constant 0 : i32
    %c64_i32_14 = arith.constant 64 : i32
    %28 = arith.muli %c0_i32_13, %c64_i32_14 : i32
    %c0_15 = arith.constant 0 : index
    %29 = arith.index_cast %28 : i32 to index
    %c0_16 = arith.constant 0 : index
    %30 = vector.load %arg1[%c0_15, %29, %c0_16] : memref<1x64x128xf32, #tpu.memory_space<vmem>>, vector<1x64x128xf32>
    %31 = vector.broadcast %26 : vector<1x1x128xf32> to vector<1x64x128xf32>
    %32 = arith.mulf %30, %31 : vector<1x64x128xf32>
    %33 = vector.broadcast %27 : vector<1x1x128xf32> to vector<1x64x128xf32>
    %34 = arith.addf %32, %33 : vector<1x64x128xf32>
    %c0_17 = arith.constant 0 : index
    %35 = arith.index_cast %28 : i32 to index
    %c0_18 = arith.constant 0 : index
    %36 = vector.load %arg4[%c0_17, %35, %c0_18] : memref<1x64x128xf32, #tpu.memory_space<vmem>>, vector<1x64x128xf32>
    tpu.vector_store %arg4[%c0_17, %35, %c0_18], %34 {strides = array<i32>} : memref<1x64x128xf32, #tpu.memory_space<vmem>>, vector<1x64x128xf32>,
    %c1_i32_19 = arith.constant 1 : i32
    return
  }
  func.func @transform_0(%arg0: i32) -> (i32, i32, i32) {
    %c0_i32 = arith.constant 0 : i32
    %c0_i32_0 = arith.constant 0 : i32
    %c0_i32_1 = arith.constant 0 : i32
    return %arg0, %c0_i32, %c0_i32_0 : i32, i32, i32
  }
  func.func @transform_1(%arg0: i32) -> (i32, i32, i32) {
    %c0_i32 = arith.constant 0 : i32
    %c0_i32_0 = arith.constant 0 : i32
    %c0_i32_1 = arith.constant 0 : i32
    %c0_i32_2 = arith.constant 0 : i32
    return %c0_i32, %c0_i32_0, %c0_i32_1 : i32, i32, i32
  }
  func.func @transform_2(%arg0: i32) -> (i32, i32, i32) {
    %c0_i32 = arith.constant 0 : i32
    %c0_i32_0 = arith.constant 0 : i32
    %c0_i32_1 = arith.constant 0 : i32
    %c0_i32_2 = arith.constant 0 : i32
    return %c0_i32, %c0_i32_0, %c0_i32_1 : i32, i32, i32
  }
  func.func @transform_3(%arg0: i32) -> (i32, i32, i32) {
    %c0_i32 = arith.constant 0 : i32
    %c0_i32_0 = arith.constant 0 : i32
    %c0_i32_1 = arith.constant 0 : i32
    return %arg0, %c0_i32, %c0_i32_0 : i32, i32, i32
  }
}

</mosaic_0001>

<bundles_post_ra>
// kernel: tile.11
= control target key start
LH: loop header
LB: loop body
LE: loop exit
PB: predicated region body
PF: predicated region fallthrough
CT: control target
= control target key end

     0   :  { %vm7_vm0 = vcmask 261120   ;;  %s37_s8 = smov 32   ;;  %s38_s9 = smov 64   ;;  %vm13_vm1 = vcmask 1048320   ;;  %vm19_vm2 = vcmask 785920   ;;  %vm25_vm3 = vcmask 523520   ;;  %s55_s0 = inlined_call_operand.vmem [shape: f32[4,32], index: 0, kind: input, shape index: {}]   ;;  %s56_s1 = inlined_call_operand.vmem [shape: f32[1,1,128], index: 1, kind: output, shape index: {}]  }
   0x1   :  { %v4_v0 = vld [vmem:[%s55_s0] sm:$0xf]  ;;  %s36_s0 = smov 96  }
   0x2   :  { %5 = vst [vmem:[#allocation1] sm:$0xf] %v4_v0 }
   0x9   :  { %v10_v1 = vld [vmem:[#allocation1 + $0x3] sm:$0x1]   ;;  %v22_v2 = vld [vmem:[#allocation1 + $0x1] sm:$0x1]   ;;  %v6_v3 = vld [vmem:[#allocation1] sm:$0x1]  }
   0xa   :  { %11 = vrot.lane.b32.xlu0 %v10_v1, %s36_s0  ;;  %23 = vrot.lane.b32.xlu1 %v22_v2, %s37_s8  ;;  %v16_v4 = vld [vmem:[#allocation1 + $0x2] sm:$0x1]   ;;  %8 = vst.msk [vmem:[#allocation0] sm:$0x1] %vm7_vm0, %v6_v3  }
   0xe   :  { %17 = vrot.lane.b32.xlu0 %v16_v4, %s38_s9 }
  0x7c   :  { %v12_v5 = vpop.permute.xlu0 %11   ;;  %v24_v6 = vpop.permute.xlu1 %23  }
  0x7d   :  { %14 = vst.msk [vmem:[#allocation0] sm:$0x1] %vm13_vm1, %v12_v5  }
  0x80   :  { %v18_v7 = vpop.permute.xlu0 %17  }
  0x81   :  { %20 = vst.msk [vmem:[#allocation0] sm:$0x1] %vm19_vm2, %v18_v7  }
  0x82   :  { %26 = vst.msk [vmem:[#allocation0] sm:$0x1] %vm25_vm3, %v24_v6  }
  0x89   :  { %v30_v8 = vld [vmem:[#allocation0] sm:$0x1] }
  0x8a   :  { %32 = vst [vmem:[%s56_s1] sm:$0x1] %v30_v8 }

// kernel: tile.10
= control target key start
LH: loop header
LB: loop body
LE: loop exit
PB: predicated region body
PF: predicated region fallthrough
CT: control target
= control target key end

     0   :  { %s22_s0 = inlined_call_operand.vmem [shape: f32[32], index: 0, kind: input, shape index: {}]   ;;  %s23_s1 = inlined_call_operand.vmem [shape: f32[4,32], index: 1, kind: output, shape index: {}]  }
   0x1   :  { %v4_v0 = vld [vmem:[%s22_s0] ss:$0 sm:$0xff] }
   0x2   :  { %5 = vst [vmem:[%s23_s1] sm:$0xf] %v4_v0 }

// kernel: grn_pallas.1
= control target key start
LH: loop header
LB: loop body
LE: loop exit
PB: predicated region body
PF: predicated region fallthrough
CT: control target
= control target key end

     0   :  { %s380_s12 = smov 0   ;;  %s435_s0 = inlined_call_operand.vmem [shape: f32[2,64,128], index: 0, kind: input, shape index: {}]   ;;  %s436_s1 = inlined_call_operand.vmem [shape: f32[1,1,128], index: 1, kind: input, shape index: {}]   ;;  %s437_s2 = inlined_call_operand.vmem [shape: f32[1,1,128], index: 2, kind: input, shape index: {}]   ;;  %s438_s3 = inlined_call_operand.vmem [shape: f32[2,64,128], index: 3, kind: output, shape index: {}]  }
   0x1 LB: > { %s320_s13 = sadd.s32 4294967295, %s355_s12   ;;  %p324_p0 = scmp.ge.s32.totalorder %s355_s12, 1  ;;  %s355_s12 = sphi %s380_s12, %s13_s12  }
   0x2   : > { %p137_p1 = scmp.lt.s32.totalorder %s355_s12, 3 }
   0x4   : > { %p138_p2 = pnand %p324_p0, %p137_p1 }
   0x5   : > { %p161_p3 = scmp.lt.s32.totalorder (!%p138_p2), %s320_s13, 1  ;;  %s357_s18 = smov (!%p138_p2), 32   ;;  %vm217_vm1 = vcmask (!%p138_p2), 1040384   ;;  %v230_v44 = vlaneseq (!%p138_p2)  ;;  %v225_v47 = vld [vmem:[%s436_s1] sm:$0x1] (!%p138_p2) }
   0x6   : > { %141 = sbr.rel (%p138_p2) target bundleno = 357 (0x165), region = 32  ;;  %s358_s19 = smov (!%p138_p2), 96   ;;  %v329_v53 = vld [vmem:[%s437_s2] ss:$0 sm:$0xff] (!%p138_p2) }
   0x7   : > { %s359_s20 = smov (!%p138_p2), 64   ;;  %v231_v45 = vshrl.u32 (!%p138_p2), %v230_v44, 7 }
   0x9   : > { %v232_v49 = vsub.s32 (!%p138_p2), 0, %v231_v45 }
   0xd   : > { %s440_s13 = smov (!%p161_p3, %s320_s13), 1 }
   0xe   : > { %s332_s14 = sshll.u32 %s440_s13, 6 }
   0xf   : > { %s165_s17 = scalar_lea.vmem %s435_s0, %s332_s14  ;;  %s170_s27 = scalar_lea.vmem %s438_s3, %s332_s14 }
  0x10   : > { %v396_v0 = vld [vmem:[%s165_s17] sm:$0xff]  ;;  %v398_v1 = vld [vmem:[%s165_s17 + $0x8] sm:$0xff]  ;;  %v400_v2 = vld [vmem:[%s165_s17 + $0x10] sm:$0xff] }
  0x11   : > { %v402_v3 = vld [vmem:[%s165_s17 + $0x18] sm:$0xff]  ;;  %v179_v4 = vmul.f32 %v396_v0, %v396_v0  ;;  %v180_v5 = vmul.f32 %v398_v1, %v398_v1  ;;  %v181_v6 = vmul.f32 %v400_v2, %v400_v2  ;;  %v410_v7 = vld [vmem:[%s165_s17 + $0x20] sm:$0xff]  ;;  %v176_v10 = vld [vmem:[%s165_s17 + $0x28] sm:$0xff] }
  0x12   : > { %v182_v8 = vmul.f32 %v402_v3, %v402_v3  ;;  %v183_v11 = vmul.f32 %v410_v7, %v410_v7  ;;  %v177_v13 = vld [vmem:[%s165_s17 + $0x30] sm:$0xff]  ;;  %v184_v14 = vmul.f32 %v176_v10, %v176_v10  ;;  %v178_v16 = vld [vmem:[%s165_s17 + $0x38] sm:$0xff] }
  0x13   : > { %v187_v9 = vadd.f32 %v180_v5, %v179_v4  ;;  %v185_v17 = vmul.f32 %v177_v13, %v177_v13  ;;  %v186_v19 = vmul.f32 %v178_v16, %v178_v16 }
  0x15   : > { %v188_v12 = vadd.f32 %v187_v9, %v181_v6 }
  0x17   : > { %v189_v15 = vadd.f32 %v188_v12, %v182_v8 }
  0x19   : > { %v190_v18 = vadd.f32 %v189_v15, %v183_v11 }
  0x1b   : > { %v191_v20 = vadd.f32 %v190_v18, %v184_v14 }
  0x1d   : > { %v192_v21 = vadd.f32 %v191_v20, %v185_v17 }
  0x1f   : > { %v193_v22 = vadd.f32 %v192_v21, %v186_v19 }
  0x21   : > { %v194_v23 = vrot.slane %v193_v22, 4 }
  0x23   : > { %v195_v24 = vadd.f32 %v194_v23, %v193_v22 }
  0x25   : > { %v196_v25 = vrot.slane %v195_v24, 2 }
  0x27   : > { %v197_v26 = vadd.f32 %v196_v25, %v195_v24 }
  0x29   : > { %v198_v27 = vrot.slane %v197_v26, 1 }
  0x2b   : > { %v199_v28 = vadd.f32 %v198_v27, %v197_v26 }
  0x2d   : > { %201 = vrot.lane.b32.xlu0 %v199_v28, %s357_s18  ;;  %207 = vrot.lane.b32.xlu1 %v199_v28, %s358_s19 }
  0x31   : > { %204 = vrot.lane.b32.xlu0 %v199_v28, %s359_s20 }
  0x9f   : > { %v202_v29 = vpop.permute.xlu0 %201  ;;  %v208_v32 = vpop.permute.xlu1 %207 }
  0xa0   : > { %v203_v30 = vadd.f32 %v202_v29, %v199_v28 }
  0xa3   : > { %v205_v31 = vpop.permute.xlu0 %204 }
  0xa4   : > { %v206_v33 = vadd.f32 %v205_v31, %v203_v30 }
  0xa6   : > { %v209_v34 = vadd.f32 %v208_v32, %v206_v33 }
  0xa8   : > { %345 = vrsqrt.f32 %v209_v34  ;;  %vm212_vm0 = vcmp.eq.f32.partialorder %v209_v34, inf  ;;  %v215_v37 = vand.u32 2147483648, %v209_v34  ;;  %vm214_vm2 = vcmp.eq.f32.partialorder %v209_v34, 0.0 }
  0xb2   : > { %v346_v35 = vpop.eup %345 }
  0xb3   : > { %v211_v36 = vmul.f32 %v346_v35, %v209_v34 }
  0xb5   : > { %v213_v38 = vsel %vm212_vm0, %v209_v34, %v211_v36 }
  0xb6   : > { %v216_v39 = vsel %vm214_vm2, %v215_v37, %v213_v38 }
  0xb7   : > { %v218_v40 = vsel %vm217_vm1, %v216_v39, 0.0 }
  0xb8   : > { %219 = vadd.xlane.f32.xlu1 %v218_v40 }
 0x145   : > { %v220_v41 = vpop.xlane.xlu1 %219 }
 0x146   : > { %v221_v42 = vmul.f32 0.0078125, %v220_v41 }
 0x148   : > { %v222_v43 = vadd.f32 1e-06, %v221_v42 }
 0x14a   : > { %347 = vrcp.f32 %v222_v43 }
 0x154   : > { %v348_v46 = vpop.eup %347 }
 0x155   : > { %v224_v48 = vmul.f32 %v348_v46, %v216_v39 }
 0x157   : > { %v226_v50 = vmul.f32 %v225_v47, %v224_v48 }
 0x159   : > { %v227_v51 = vadd.f32 1.0, %v226_v50 }
 0x15b   : > { %v233_v52 = vrot.slane %v227_v51, %v232_v49 }
 0x15d   : > { %v235_v54 = vmul.f32 %v233_v52, %v396_v0  ;;  %v236_v55 = vmul.f32 %v233_v52, %v398_v1  ;;  %v237_v56 = vmul.f32 %v233_v52, %v400_v2  ;;  %v238_v57 = vmul.f32 %v233_v52, %v402_v3 }
 0x15e   : > { %v239_v58 = vmul.f32 %v233_v52, %v410_v7  ;;  %v240_v59 = vmul.f32 %v233_v52, %v176_v10  ;;  %v241_v60 = vmul.f32 %v233_v52, %v177_v13  ;;  %v242_v61 = vmul.f32 %v233_v52, %v178_v16 }
 0x15f   : > { %v249_v62 = vadd.f32 %v329_v53, %v235_v54  ;;  %v250_v63 = vadd.f32 %v329_v53, %v236_v55  ;;  %v251_v4 = vadd.f32 %v329_v53, %v237_v56  ;;  %v252_v0 = vadd.f32 %v329_v53, %v238_v57 }
 0x160   : > { %v253_v5 = vadd.f32 %v329_v53, %v239_v58  ;;  %v254_v1 = vadd.f32 %v329_v53, %v240_v59  ;;  %v255_v6 = vadd.f32 %v329_v53, %v241_v60  ;;  %v256_v2 = vadd.f32 %v329_v53, %v242_v61 }
 0x161   : > { %257 = vst [vmem:[%s170_s27] sm:$0xff] %v249_v62  ;;  %258 = vst [vmem:[%s170_s27 + $0x8] sm:$0xff] %v250_v63 }
 0x162   : > { %259 = vst [vmem:[%s170_s27 + $0x10] sm:$0xff] %v251_v4  ;;  %260 = vst [vmem:[%s170_s27 + $0x18] sm:$0xff] %v252_v0 }
 0x163   : > { %261 = vst [vmem:[%s170_s27 + $0x20] sm:$0xff] %v253_v5  ;;  %262 = vst [vmem:[%s170_s27 + $0x28] sm:$0xff] %v254_v1 }
 0x164   : > { %263 = vst [vmem:[%s170_s27 + $0x30] sm:$0xff] %v255_v6  ;;  %264 = vst [vmem:[%s170_s27 + $0x38] sm:$0xff] %v256_v2 }
 0x165 PF: > { %s13_s12 = sadd.s32 1, %s355_s12  }
 0x166   : > { %p10_p4 = scmp.ge.s32.totalorder %s13_s12, 4  }
 0x168   :  { %12 = sbr.rel (!%p10_p4) target bundleno = 1 (0x1), region = 62 }

</bundles_post_ra>
